<compile_context>
chip_gen: v6e
topology: v6e:2x2x1
jax: 0.10.0
libtpu: 0.0.40
codegen_flags: <defaults>
</compile_context>

<pallas_src>
import math

import jax
import jax.numpy as jnp
from jax.experimental import pallas as pl
from jax.experimental.pallas import tpu as pltpu


def _round_up(n, m):
    return ((n + m - 1) // m) * m


def _vmem_capacity_bytes():
    """Per-core VMEM capacity; conservative 64 MiB (v7x per-TC) if unavailable."""
    try:
        cap = int(pltpu.get_tpu_info().vmem_capacity_bytes)
        if cap > 0:
            return cap
    except Exception:
        pass
    return 64 << 20


def _pad_embed(e):
    e_pad = _round_up(e, 128)
    if e_pad > 128:
        # v6e/v7x MXUs are 256x256; keep the N dim of the 2nd matmul a multiple of 256.
        e_pad = _round_up(e_pad, 256)
    return e_pad


def _choose_tm(m, requested=None):
    m8 = _round_up(max(m, 1), 8)
    if requested is not None:
        return max(8, min(_round_up(requested, 8), m8))
    if m8 <= 128:
        return m8
    # Keep >=2 row tiles so the "parallel" axis can shard across both v7x TensorCores.
    for cand in (1024, 512, 256, 128):
        if m8 >= 2 * cand:
            return cand
    return m8  # 128 < m8 < 256: one exact tile beats padded waste


def _choose_th(h_pad, weight_budget_bytes, e_pad, wbytes, requested=None):
    """Largest th (multiple of 128, divisor of h_pad) whose double-buffered w1+w2
    slices fit weight_budget_bytes."""
    n = h_pad // 128
    if requested is not None:
        dmax = max(1, min(n, requested // 128))
    else:
        per128 = 4 * e_pad * 128 * wbytes  # 2 bufs x (w1 slice + w2 slice) per 128 of th
        dmax = max(1, min(n, weight_budget_bytes // per128))
    d = 1
    for cand in range(1, dmax + 1):
        if n % cand == 0:
            d = cand
    return 128 * d


# ----------------------------------------------------------------------------- kernels
def _ffn_resident_kernel(x_ref, w1_ref, b1_ref, w2_ref, b2_ref, o_ref):
    # Full weights stay resident in VMEM; one row tile per grid step.
    x = x_ref[...]
    h = jnp.dot(x.astype(w1_ref.dtype), w1_ref[...],
                preferred_element_type=jnp.float32) + b1_ref[...]
    h = jnp.maximum(h, 0.0)                       # ReLU; dropout(p=0.0) is the identity
    y = jnp.dot(h.astype(w2_ref.dtype), w2_ref[...],
                preferred_element_type=jnp.float32)
    o_ref[...] = y + b2_ref[...] + x.astype(jnp.float32)


def _ffn_streaming_kernel(x_ref, w1_ref, b1_ref, w2_ref, b2_ref, o_ref):
    # Grid: (row tile i, hidden tile j); j is the reduction axis over H.
    j = pl.program_id(1)
    x = x_ref[...]

    @pl.when(j == 0)
    def _():
        # Fold residual + output bias into the accumulator init.  o_ref is f32 and
        # resident across j, so it doubles as the accumulator (no VMEM scratch).
        o_ref[...] = x.astype(jnp.float32) + b2_ref[...]

    h = jnp.dot(x.astype(w1_ref.dtype), w1_ref[...],
                preferred_element_type=jnp.float32) + b1_ref[...]
    h = jnp.maximum(h, 0.0)
    o_ref[...] += jnp.dot(h.astype(w2_ref.dtype), w2_ref[...],
                          preferred_element_type=jnp.float32)


# ----------------------------------------------------------------------------- wrapper
def prepare_params(w1, b1, w2, b2, *, compute_dtype=jnp.bfloat16):
    """Pad + cast the weights ONCE (outside the per-call hot path)."""
    E, H = w1.shape
    E_pad = _pad_embed(E)
    H_pad = _round_up(H, 128)
    cdt = jnp.dtype(compute_dtype)
    w1p = jnp.zeros((E_pad, H_pad), cdt).at[:E, :H].set(w1.astype(cdt))
    w2p = jnp.zeros((H_pad, E_pad), cdt).at[:H, :E].set(w2.astype(cdt))
    b1p = jnp.zeros((1, H_pad), jnp.float32).at[0, :H].set(b1.astype(jnp.float32))
    b2p = jnp.zeros((1, E_pad), jnp.float32).at[0, :E].set(b2.astype(jnp.float32))
    return {"w1": w1p, "b1": b1p, "w2": w2p, "b2": b2p,
            "E": E, "H": H, "E_pad": E_pad, "H_pad": H_pad, "compute_dtype": cdt}


def ffn_forward(x, params, *, mode="auto", tm=None, th=None):
    """x: (..., E).  params from prepare_params().  Returns (..., E) in x.dtype."""
    E, H = params["E"], params["H"]
    E_pad, H_pad = params["E_pad"], params["H_pad"]
    cdt = params["compute_dtype"]
    w1p, b1p, w2p, b2p = params["w1"], params["b1"], params["w2"], params["b2"]
    wbytes = cdt.itemsize
    xbytes = jnp.dtype(x.dtype).itemsize

    assert x.shape[-1] == E, "last dim of x must equal embed_dim"
    lead = x.shape[:-1]
    M = math.prod(lead)

    capacity = _vmem_capacity_bytes()
    budget = (capacity * 7) // 10          # headroom for Mosaic internal scratch

    def row_tile_bytes(t):                 # double-buffered x tiles + f32 out tiles
        return 2 * t * E_pad * xbytes + 2 * t * E_pad * 4

    tm_eff = _choose_tm(M, tm)
    while tm_eff > 128 and row_tile_bytes(tm_eff) > budget // 2:
        tm_eff = max(128, _round_up(tm_eff // 2, 8))
    M_pad = _round_up(max(M, 1), tm_eff)
    n_row_tiles = M_pad // tm_eff

    # Flatten / pad x only when needed (zeros are inert through the FFN; sliced off).
    x2d = x.reshape(M, E)
    if M_pad != M or E_pad != E:
        x2d = jnp.zeros((M_pad, E_pad), x.dtype).at[:M, :E].set(x2d)

    bias_bytes = 2 * (H_pad + E_pad) * 4 * 2
    resident_bytes = 4 * E_pad * H_pad * wbytes + bias_bytes + row_tile_bytes(tm_eff)
    use_resident = (mode == "resident") or (mode == "auto" and resident_bytes <= budget)
    if mode == "streaming":
        use_resident = False

    flops = 4 * M_pad * E_pad * H_pad      # two matmuls, 2*M*E*H flops each

    if use_resident:
        grid = (n_row_tiles,)
        in_specs = [
            pl.BlockSpec((tm_eff, E_pad), lambda i: (i, 0)),    # x rows
            pl.BlockSpec((E_pad, H_pad), lambda i: (0, 0)),     # w1 (resident)
            pl.BlockSpec((1, H_pad), lambda i: (0, 0)),         # b1
            pl.BlockSpec((H_pad, E_pad), lambda i: (0, 0)),     # w2 (resident)
            pl.BlockSpec((1, E_pad), lambda i: (0, 0)),         # b2
        ]
        out_specs = pl.BlockSpec((tm_eff, E_pad), lambda i: (i, 0))
        kernel = _ffn_resident_kernel
        dim_sem = ("parallel",)
        need = resident_bytes
        weight_hbm = 2 * E_pad * H_pad * wbytes                 # read once
    else:
        th_budget = max(budget - row_tile_bytes(tm_eff) - bias_bytes,
                        4 * E_pad * 128 * wbytes)
        th_eff = _choose_th(H_pad, th_budget, E_pad, wbytes, th)
        grid = (n_row_tiles, H_pad // th_eff)
        in_specs = [
            pl.BlockSpec((tm_eff, E_pad), lambda i, j: (i, 0)),  # x rows (resident over j)
            pl.BlockSpec((E_pad, th_eff), lambda i, j: (0, j)),  # w1 H-slice
            pl.BlockSpec((1, th_eff), lambda i, j: (0, j)),      # b1 H-slice
            pl.BlockSpec((th_eff, E_pad), lambda i, j: (j, 0)),  # w2 H-slice
            pl.BlockSpec((1, E_pad), lambda i, j: (0, 0)),       # b2 (constant)
        ]
        out_specs = pl.BlockSpec((tm_eff, E_pad), lambda i, j: (i, 0))
        kernel = _ffn_streaming_kernel
        dim_sem = ("parallel", "arbitrary")
        need = row_tile_bytes(tm_eff) + 4 * E_pad * th_eff * wbytes + bias_bytes
        weight_hbm = n_row_tiles * 2 * E_pad * H_pad * wbytes    # re-streamed per row tile

    vmem_limit = min(max(need * 5 // 4, 32 << 20), (capacity * 15) // 16)
    vmem_limit = max(vmem_limit, need)     # never provision below the real requirement

    cost = pl.CostEstimate(
        flops=int(flops),
        transcendentals=0,
        bytes_accessed=int(M_pad * E_pad * (xbytes + 4) + weight_hbm + (H_pad + E_pad) * 4),
    )

    out = pl.pallas_call(
        kernel,
        out_shape=jax.ShapeDtypeStruct((M_pad, E_pad), jnp.float32),
        grid_spec=pltpu.PrefetchScalarGridSpec(
            num_scalar_prefetch=0,
            grid=grid,
            in_specs=in_specs,
            out_specs=out_specs,
        ),
        compiler_params=pltpu.CompilerParams(
            dimension_semantics=dim_sem,
            vmem_limit_bytes=int(vmem_limit),
        ),
        cost_estimate=cost,
    )(x2d, w1p, b1p, w2p, b2p)

    return out[:M, :E].astype(x.dtype).reshape(*lead, E)


# ----------------------------------------------------------------------------- params / ref
def xavier_uniform(key, fan_in, fan_out, shape):
    bound = math.sqrt(6.0 / (fan_in + fan_out))
    return jax.random.uniform(key, shape, jnp.float32, -bound, bound)


def make_params(key, embed_dim, hidden_dim):
    k1, k2, k3, k4 = jax.random.split(key, 4)
    # Xavier-uniform for weight matrices (matches _init_weights for p.dim() > 1); stored
    # as (in, out) so the kernel does x @ W directly.
    w1 = xavier_uniform(k1, embed_dim, hidden_dim, (embed_dim, hidden_dim))
    w2 = xavier_uniform(k2, hidden_dim, embed_dim, (hidden_dim, embed_dim))
    # Biases (dim == 1) keep PyTorch Linear default: U(-1/sqrt(fan_in), 1/sqrt(fan_in)).
    b1 = jax.random.uniform(k3, (hidden_dim,), jnp.float32,
                            -1.0 / math.sqrt(embed_dim), 1.0 / math.sqrt(embed_dim))
    b2 = jax.random.uniform(k4, (embed_dim,), jnp.float32,
                            -1.0 / math.sqrt(hidden_dim), 1.0 / math.sqrt(hidden_dim))
    return w1, b1, w2, b2


def ffn_reference(x, w1, b1, w2, b2):
    h = jnp.maximum(x @ w1 + b1, 0.0)
    return h @ w2 + b2 + x


if __name__ == "__main__":
    B, S, E, H = 2, 8, 32, 256
    key = jax.random.PRNGKey(0)
    kx, kp = jax.random.split(key)
    x = jax.random.normal(kx, (B, S, E), jnp.float32)
    w1, b1, w2, b2 = make_params(kp, E, H)

    ref = ffn_reference(x, w1, b1, w2, b2)

    # f32 compute path (tight tolerance) -- resident-weight mode auto-selected.
    p_f32 = prepare_params(w1, b1, w2, b2, compute_dtype=jnp.float32)
    out_f32 = jax.block_until_ready(ffn_forward(x, p_f32))
    assert out_f32.shape == (B, S, E)
    assert jnp.allclose(out_f32, ref, atol=1e-5, rtol=1e-5), "f32 resident mismatch"

    # Forced streaming path (H tiled at 128 -> 2 reduction steps) for structural coverage.
    out_stream = jax.block_until_ready(ffn_forward(x, p_f32, mode="streaming", th=128))
    assert jnp.allclose(out_stream, ref, atol=1e-5, rtol=1e-5), "f32 streaming mismatch"

    # Default bf16-matmul / f32-accumulate fast path (looser tolerance).
    p_bf16 = prepare_params(w1, b1, w2, b2)
    out_bf16 = jax.block_until_ready(ffn_forward(x, p_bf16))
    assert out_bf16.shape == (B, S, E)
    assert jnp.allclose(out_bf16, ref, atol=5e-2, rtol=5e-2), "bf16 mismatch"

    # Ragged row count (M not a multiple of 8) exercises the padding path.
    x_rag = jax.random.normal(kx, (2, 7, E), jnp.float32)
    ref_rag = ffn_reference(x_rag, w1, b1, w2, b2)
    out_rag = jax.block_until_ready(ffn_forward(x_rag, p_f32))
    assert jnp.allclose(out_rag, ref_rag, atol=1e-5, rtol=1e-5), "ragged mismatch"

    print("KERNEL_OK")
</pallas_src>

<mosaic_0001>
module attributes {stable_mosaic.version = 11 : i64} {
  func.func @_ffn_resident_kernel(%arg0: i32, %arg1: memref<16x128xf32, #tpu.memory_space<vmem>>, %arg2: memref<128x256xf32, #tpu.memory_space<vmem>>, %arg3: memref<1x256xf32, #tpu.memory_space<vmem>>, %arg4: memref<256x128xf32, #tpu.memory_space<vmem>>, %arg5: memref<1x128xf32, #tpu.memory_space<vmem>>, %arg6: memref<16x128xf32, #tpu.memory_space<vmem>>) attributes {dimension_semantics = [#tpu.dimension_semantics<parallel>], iteration_bounds = array<i64: 1>, scalar_prefetch = 0 : i64, scratch_operands = 0 : i64, tpu.core_type = #tpu.core_type<tc>, window_params = [{transform_indices = @transform_0, window_bounds = array<i64: 16, 128>}, {pipeline_mode = #tpu.pipeline_mode<synchronous>, transform_indices = @transform_1, window_bounds = array<i64: 128, 256>}, {pipeline_mode = #tpu.pipeline_mode<synchronous>, transform_indices = @transform_2, window_bounds = array<i64: 1, 256>}, {pipeline_mode = #tpu.pipeline_mode<synchronous>, transform_indices = @transform_3, window_bounds = array<i64: 256, 128>}, {pipeline_mode = #tpu.pipeline_mode<synchronous>, transform_indices = @transform_4, window_bounds = array<i64: 1, 128>}, {transform_indices = @transform_5, window_bounds = array<i64: 16, 128>}]} {
    %c0 = arith.constant 0 : index
    %c0_0 = arith.constant 0 : index
    %0 = vector.load %arg1[%c0, %c0_0] : memref<16x128xf32, #tpu.memory_space<vmem>>, vector<16x128xf32>
    %c0_1 = arith.constant 0 : index
    %c0_2 = arith.constant 0 : index
    %1 = vector.load %arg2[%c0_1, %c0_2] : memref<128x256xf32, #tpu.memory_space<vmem>>, vector<128x256xf32>
    %cst = arith.constant dense<0.000000e+00> : vector<16x256xf32>
    %2 = tpu.matmul %0, %1, %cst {dimension_numbers = #tpu.dot_dimension_numbers<[1], [0], [0], [1], [0, 0, 1, 1], [], []>} : vector<16x128xf32>, vector<128x256xf32>, vector<16x256xf32> -> vector<16x256xf32>
    %c0_3 = arith.constant 0 : index
    %c0_4 = arith.constant 0 : index
    %3 = vector.load %arg3[%c0_3, %c0_4] : memref<1x256xf32, #tpu.memory_space<vmem>>, vector<1x256xf32>
    %4 = vector.broadcast %3 : vector<1x256xf32> to vector<16x256xf32>
    %5 = arith.addf %2, %4 : vector<16x256xf32>
    %cst_5 = arith.constant 0.000000e+00 : f32
    %6 = vector.broadcast %cst_5 : f32 to vector<16x256xf32>
    %7 = arith.maximumf %5, %6 : vector<16x256xf32>
    %c0_6 = arith.constant 0 : index
    %c0_7 = arith.constant 0 : index
    %8 = vector.load %arg4[%c0_6, %c0_7] : memref<256x128xf32, #tpu.memory_space<vmem>>, vector<256x128xf32>
    %cst_8 = arith.constant dense<0.000000e+00> : vector<16x128xf32>
    %9 = tpu.matmul %7, %8, %cst_8 {dimension_numbers = #tpu.dot_dimension_numbers<[1], [0], [0], [1], [0, 0, 1, 1], [], []>} : vector<16x256xf32>, vector<256x128xf32>, vector<16x128xf32> -> vector<16x128xf32>
    %c0_9 = arith.constant 0 : index
    %c0_10 = arith.constant 0 : index
    %10 = vector.load %arg5[%c0_9, %c0_10] : memref<1x128xf32, #tpu.memory_space<vmem>>, vector<1x128xf32>
    %11 = vector.broadcast %10 : vector<1x128xf32> to vector<16x128xf32>
    %12 = arith.addf %9, %11 : vector<16x128xf32>
    %13 = arith.addf %12, %0 : vector<16x128xf32>
    %c0_11 = arith.constant 0 : index
    %c0_12 = arith.constant 0 : index
    %14 = vector.load %arg6[%c0_11, %c0_12] : memref<16x128xf32, #tpu.memory_space<vmem>>, vector<16x128xf32>
    tpu.vector_store %arg6[%c0_11, %c0_12], %13 {strides = array<i32>} : memref<16x128xf32, #tpu.memory_space<vmem>>, vector<16x128xf32>,
    return
  }
  func.func @transform_0(%arg0: i32) -> (i32, i32) {
    %c0_i32 = arith.constant 0 : i32
    %c0_i32_0 = arith.constant 0 : i32
    return %arg0, %c0_i32 : i32, i32
  }
  func.func @transform_1(%arg0: i32) -> (i32, i32) {
    %c0_i32 = arith.constant 0 : i32
    %c0_i32_0 = arith.constant 0 : i32
    %c0_i32_1 = arith.constant 0 : i32
    return %c0_i32, %c0_i32_0 : i32, i32
  }
  func.func @transform_2(%arg0: i32) -> (i32, i32) {
    %c0_i32 = arith.constant 0 : i32
    %c0_i32_0 = arith.constant 0 : i32
    %c0_i32_1 = arith.constant 0 : i32
    return %c0_i32, %c0_i32_0 : i32, i32
  }
  func.func @transform_3(%arg0: i32) -> (i32, i32) {
    %c0_i32 = arith.constant 0 : i32
    %c0_i32_0 = arith.constant 0 : i32
    %c0_i32_1 = arith.constant 0 : i32
    return %c0_i32, %c0_i32_0 : i32, i32
  }
  func.func @transform_4(%arg0: i32) -> (i32, i32) {
    %c0_i32 = arith.constant 0 : i32
    %c0_i32_0 = arith.constant 0 : i32
    %c0_i32_1 = arith.constant 0 : i32
    return %c0_i32, %c0_i32_0 : i32, i32
  }
  func.func @transform_5(%arg0: i32) -> (i32, i32) {
    %c0_i32 = arith.constant 0 : i32
    %c0_i32_0 = arith.constant 0 : i32
    return %arg0, %c0_i32 : i32, i32
  }
}

</mosaic_0001>

<bundles_post_ra>
// kernel: tpu_custom_call.1
= control target key start
LH: loop header
LB: loop body
LE: loop exit
PB: predicated region body
PF: predicated region fallthrough
CT: control target
= control target key end

     0   :  { %10 = vsyncpa [#allocation3], 0  ;;  %s527_s0 = inlined_call_operand.hbm [shape: f32[16,128], index: 0, kind: input, shape index: {}]   ;;  %s528_s1 = inlined_call_operand.hbm [shape: f32[128,256], index: 1, kind: input, shape index: {}]   ;;  %s529_s2 = inlined_call_operand.vmem [shape: f32[1,256], index: 2, kind: input, shape index: {}]   ;;  %s530_s3 = inlined_call_operand.hbm [shape: f32[256,128], index: 3, kind: input, shape index: {}]   ;;  %s531_s4 = inlined_call_operand.vmem [shape: f32[1,128], index: 4, kind: input, shape index: {}]   ;;  %s532_s5 = inlined_call_operand.hbm [shape: f32[16,128], index: 5, kind: output, shape index: {}]  }
   0x1   :  { %11 = vsyncpa [#allocation6], 0 }
   0x2   :  { %12 = vsyncpa [#allocation4], 0  ;;  %s459_s18 = smov [#allocation5]  }
   0x3   :  { %s30_s19 = sshll.u32 %s459_s18, 4  ;;  %s31_s19 = int_to_ptr.vmem [resolvable:$true] %s30_s19 }
   0x4   :  { %s381_s20 = scalar_lea.vmem %s31_s19, 4096  ;;  %p386_p1 = scmp.lt.s32.totalorder %s31_s19, %s31_s19 }
   0x5   :  { %p382_p0 = scmp.ne.s32.totalorder %s31_s19, %s381_s20  ;;  %p387_p2 = scmp.lt.s32.totalorder %s381_s20, %s381_s20 }
   0x7   :  { %p388_p3 = por %p387_p2, %p386_p1 }
   0x9   :  { %p389_p4 = pnand %p388_p3, %p382_p0 }
   0xb   :  { %392 = shalt.err (!%p389_p4)
}
   0xc   :  { %s460_s21 = smov 256   ;;  %s461_s22 = smov 16  }
   0xd   :  { %36 = dma.hbm_to_vmem [thread:$0]  %s528_s1, 4096, %s31_s19, [#allocation6], %s460_s21, %s460_s21, %s461_s22  }
   0xe   :  { %s462_s25 = smov [#allocation2]  }
   0xf   :  { %s18_s26 = sshll.u32 %s462_s25, 4  ;;  %s19_s26 = int_to_ptr.vmem [resolvable:$true] %s18_s26 }
  0x10   :  { %s401_s27 = scalar_lea.vmem %s19_s26, 256  ;;  %p406_p6 = scmp.lt.s32.totalorder %s19_s26, %s19_s26 }
  0x11   :  { %p402_p5 = scmp.ne.s32.totalorder %s19_s26, %s401_s27  ;;  %p407_p7 = scmp.lt.s32.totalorder %s401_s27, %s401_s27 }
  0x13   :  { %p408_p8 = por %p407_p7, %p406_p6 }
  0x15   :  { %p409_p9 = pnand %p408_p8, %p402_p5 }
  0x17   :  { %412 = shalt.err (!%p409_p9)
}
  0x18   :  { %s463_s28 = smov 128   ;;  %s464_s29 = smov 8  }
  0x19   :  { %24 = dma.hbm_to_vmem [thread:$0]  %s527_s0, 256, %s19_s26, [#allocation3], %s463_s28, %s463_s28, %s464_s29  }
  0x1a   :  { %s465_s1 = smov [#allocation7]  }
  0x1b   :  { %s44_s7 = sshll.u32 %s465_s1, 4  ;;  %s45_s7 = int_to_ptr.vmem [resolvable:$true] %s44_s7 }
  0x1c   :  { %s421_s8 = scalar_lea.vmem %s45_s7, 4096  ;;  %p426_p11 = scmp.lt.s32.totalorder %s45_s7, %s45_s7 }
  0x1d   :  { %p422_p10 = scmp.ne.s32.totalorder %s45_s7, %s421_s8  ;;  %p427_p12 = scmp.lt.s32.totalorder %s421_s8, %s421_s8 }
  0x1f   :  { %p428_p13 = por %p427_p12, %p426_p11 }
  0x21   :  { %p429_p0 = pnand %p428_p13, %p422_p10 }
  0x23   :  { %432 = shalt.err (!%p429_p0)
}
  0x24   :  { %50 = dma.hbm_to_vmem [thread:$0]  %s530_s3, 4096, %s45_s7, [#allocation6], %s463_s28, %s463_s28, %s464_s29  }
  0x25   :  { %453 = dma.done.wait [#allocation3], 256  }
  0x26   :  { %454 = vsyncadd [#allocation3], 4294967040 }
  0x27   :  { %455 = dma.done.wait [#allocation6], 8192  }
  0x28   :  { %456 = vsyncadd [#allocation6], 4294959104  ;;  %v466_v0 = vmov 0.0   ;;  %v95_v1 = vld [vmem:[#allocation5 + $0xf8] sm:$0xff]  ;;  %v94_v2 = vld [vmem:[#allocation5 + $0xf0] sm:$0xff]  ;;  %s467_s12 = smov [#allocation8]  }
  0x29   :  { %172 = vmatprep.mubr.f32.mxu0 %v466_v0  ;;  %v93_v3 = vld [vmem:[#allocation5 + $0xe8] sm:$0xff]  ;;  %108 = vmatprep.subr.mxu0 %v95_v1  ;;  %v92_v4 = vld [vmem:[#allocation5 + $0xe0] sm:$0xff]  ;;  %v91_v5 = vld [vmem:[#allocation5 + $0xd8] sm:$0xff]  ;;  %s312_s13 = sshll.u32 %s467_s12, 4  ;;  %s313_s13 = int_to_ptr.vmem [resolvable:$true] %s312_s13 }
  0x2a   :  { %109 = vmatpush1.msra.mxu0 %v94_v2  ;;  %v90_v6 = vld [vmem:[#allocation5 + $0xd0] sm:$0xff]  ;;  %v89_v7 = vld [vmem:[#allocation5 + $0xc8] sm:$0xff]  ;;  %v88_v8 = vld [vmem:[#allocation5 + $0xc0] sm:$0xff]  ;;  %s433_s14 = scalar_lea.vmem %s313_s13, 256  ;;  %p438_p2 = scmp.lt.s32.totalorder %s313_s13, %s313_s13 }
  0x2b   :  { %110 = vmatprep.subr.mxu0 %v93_v3  ;;  %v87_v9 = vld [vmem:[#allocation5 + $0xb8] sm:$0xff]  ;;  %v86_v10 = vld [vmem:[#allocation5 + $0xb0] sm:$0xff]  ;;  %v85_v11 = vld [vmem:[#allocation5 + $0xa8] sm:$0xff]  ;;  %p434_p1 = scmp.ne.s32.totalorder %s313_s13, %s433_s14  ;;  %p439_p3 = scmp.lt.s32.totalorder %s433_s14, %s433_s14 }
  0x2c   :  { %111 = vmatpush1.msra.mxu0 %v92_v4  ;;  %v84_v12 = vld [vmem:[#allocation5 + $0xa0] sm:$0xff]  ;;  %v83_v13 = vld [vmem:[#allocation5 + $0x98] sm:$0xff]  ;;  %v82_v14 = vld [vmem:[#allocation5 + $0x90] sm:$0xff] }
  0x2d   :  { %112 = vmatprep.subr.mxu0 %v91_v5  ;;  %v220_v15 = vld [vmem:[#allocation7 + $0xf8] sm:$0xff]  ;;  %v81_v17 = vld [vmem:[#allocation5 + $0x88] sm:$0xff]  ;;  %v219_v18 = vld [vmem:[#allocation7 + $0xf0] sm:$0xff]  ;;  %p440_p4 = por %p439_p3, %p438_p2 }
  0x2e   :  { %113 = vmatpush1.msra.mxu0 %v90_v6  ;;  %v204_v16 = vld [vmem:[#allocation7 + $0x78] sm:$0xff]  ;;  %326 = vmatprep.subr.mxu1 %v220_v15  ;;  %v203_v19 = vld [vmem:[#allocation7 + $0x70] sm:$0xff]  ;;  %v80_v20 = vld [vmem:[#allocation5 + $0x80] sm:$0xff] }
  0x2f   :  { %114 = vmatprep.subr.mxu0 %v89_v7  ;;  %327 = vmatpush3.msra.mxu1 %v204_v16  ;;  %v218_v21 = vld [vmem:[#allocation7 + $0xe8] sm:$0xff]  ;;  %v79_v22 = vld [vmem:[#allocation5 + $0x78] sm:$0xff]  ;;  %v78_v24 = vld [vmem:[#allocation5 + $0x70] sm:$0xff]  ;;  %p441_p5 = pnand %p440_p4, %p434_p1 }
  0x30   :  { %115 = vmatpush1.msra.mxu0 %v88_v8  ;;  %328 = vmatprep.subr.mxu1 %v219_v18  ;;  %v202_v23 = vld [vmem:[#allocation7 + $0x68] sm:$0xff]  ;;  %v217_v25 = vld [vmem:[#allocation7 + $0xe0] sm:$0xff]  ;;  %v216_v29 = vld [vmem:[#allocation7 + $0xd8] sm:$0xff] }
  0x31   :  { %116 = vmatprep.subr.mxu0 %v87_v9  ;;  %329 = vmatpush3.msra.mxu1 %v203_v19  ;;  %v77_v26 = vld [vmem:[#allocation5 + $0x68] sm:$0xff]  ;;  %v201_v27 = vld [vmem:[#allocation7 + $0x60] sm:$0xff]  ;;  %v75_v30 = vld [vmem:[#allocation5 + $0x58] sm:$0xff] }
  0x32   :  { %117 = vmatpush1.msra.mxu0 %v86_v10  ;;  %330 = vmatprep.subr.mxu1 %v218_v21  ;;  %v76_v28 = vld [vmem:[#allocation5 + $0x60] sm:$0xff]  ;;  %v200_v31 = vld [vmem:[#allocation7 + $0x58] sm:$0xff]  ;;  %v74_v32 = vld [vmem:[#allocation5 + $0x50] sm:$0xff] }
  0x33   :  { %118 = vmatprep.subr.mxu0 %v85_v11  ;;  %331 = vmatpush3.msra.mxu1 %v202_v23  ;;  %v215_v33 = vld [vmem:[#allocation7 + $0xd0] sm:$0xff]  ;;  %v73_v34 = vld [vmem:[#allocation5 + $0x48] sm:$0xff]  ;;  %v72_v36 = vld [vmem:[#allocation5 + $0x40] sm:$0xff] }
  0x34   :  { %119 = vmatpush1.msra.mxu0 %v84_v12  ;;  %332 = vmatprep.subr.mxu1 %v217_v25  ;;  %v199_v35 = vld [vmem:[#allocation7 + $0x50] sm:$0xff]  ;;  %v214_v37 = vld [vmem:[#allocation7 + $0xc8] sm:$0xff]  ;;  %v71_v38 = vld [vmem:[#allocation5 + $0x38] sm:$0xff] }
  0x35   :  { %120 = vmatprep.subr.mxu0 %v83_v13  ;;  %333 = vmatpush3.msra.mxu1 %v201_v27  ;;  %v198_v39 = vld [vmem:[#allocation7 + $0x48] sm:$0xff]  ;;  %v70_v40 = vld [vmem:[#allocation5 + $0x30] sm:$0xff]  ;;  %v213_v41 = vld [vmem:[#allocation7 + $0xc0] sm:$0xff] }
  0x36   :  { %121 = vmatpush1.msra.mxu0 %v82_v14  ;;  %334 = vmatprep.subr.mxu1 %v216_v29  ;;  %v69_v42 = vld [vmem:[#allocation5 + $0x28] sm:$0xff]  ;;  %v197_v43 = vld [vmem:[#allocation7 + $0x40] sm:$0xff]  ;;  %v212_v45 = vld [vmem:[#allocation7 + $0xb8] sm:$0xff] }
  0x37   :  { %122 = vmatprep.subr.mxu0 %v81_v17  ;;  %335 = vmatpush3.msra.mxu1 %v200_v31  ;;  %v68_v44 = vld [vmem:[#allocation5 + $0x20] sm:$0xff]  ;;  %v67_v46 = vld [vmem:[#allocation5 + $0x18] sm:$0xff]  ;;  %v66_v48 = vld [vmem:[#allocation5 + $0x10] sm:$0xff] }
  0x38   :  { %123 = vmatpush1.msra.mxu0 %v80_v20  ;;  %336 = vmatprep.subr.mxu1 %v215_v33  ;;  %v196_v47 = vld [vmem:[#allocation7 + $0x38] sm:$0xff]  ;;  %v211_v49 = vld [vmem:[#allocation7 + $0xb0] sm:$0xff]  ;;  %v65_v50 = vld [vmem:[#allocation5 + $0x8] sm:$0xff] }
  0x39   :  { %124 = vmatprep.subr.mxu0 %v79_v22  ;;  %337 = vmatpush3.msra.mxu1 %v199_v35  ;;  %v195_v51 = vld [vmem:[#allocation7 + $0x30] sm:$0xff]  ;;  %v64_v52 = vld [vmem:[#allocation5] sm:$0xff]  ;;  %v210_v53 = vld [vmem:[#allocation7 + $0xa8] sm:$0xff] }
  0x3a   :  { %125 = vmatpush1.msra.mxu0 %v78_v24  ;;  %338 = vmatprep.subr.mxu1 %v214_v37  ;;  %v62_v54 = vld [vmem:[#allocation2] sm:$0xff]  ;;  %v194_v55 = vld [vmem:[#allocation7 + $0x28] sm:$0xff]  ;;  %v209_v56 = vld [vmem:[#allocation7 + $0xa0] sm:$0xff] }
  0x3b   :  { %126 = vmatprep.subr.mxu0 %v77_v26  ;;  %339 = vmatpush3.msra.mxu1 %v198_v39  ;;  %v193_v57 = vld [vmem:[#allocation7 + $0x20] sm:$0xff]  ;;  %v63_v58 = vld [vmem:[#allocation2 + $0x8] sm:$0xff]  ;;  %v207_v61 = vld [vmem:[#allocation7 + $0x90] sm:$0xff] }
  0x3c   :  { %127 = vmatpush1.msra.mxu0 %v76_v28  ;;  %340 = vmatprep.subr.mxu1 %v213_v41  ;;  %v208_v59 = vld [vmem:[#allocation7 + $0x98] sm:$0xff]  ;;  %v191_v62 = vld [vmem:[#allocation7 + $0x10] sm:$0xff]  ;;  %v206_v63 = vld [vmem:[#allocation7 + $0x88] sm:$0xff] }
  0x3d   :  { %128 = vmatprep.subr.mxu0 %v75_v30  ;;  %341 = vmatpush3.msra.mxu1 %v197_v43  ;;  %v192_v60 = vld [vmem:[#allocation7 + $0x18] sm:$0xff]  ;;  %v190_v1 = vld [vmem:[#allocation7 + $0x8] sm:$0xff]  ;;  %v205_v2 = vld [vmem:[#allocation7 + $0x80] sm:$0xff] }
  0x3e   :  { %129 = vmatpush1.msra.mxu0 %v74_v32  ;;  %342 = vmatprep.subr.mxu1 %v212_v45  ;;  %v189_v3 = vld [vmem:[#allocation7] sm:$0xff]  ;;  %v96_v6 = vld [vmem:[%s529_s2] sm:$0x3] }
  0x3f   :  { %130 = vmatprep.subr.mxu0 %v73_v34  ;;  %343 = vmatpush3.msra.mxu1 %v196_v47  ;;  %v325_v23 = vld [vmem:[%s531_s4] ss:$0 sm:$0xff] }
  0x40   :  { %131 = vmatpush1.msra.mxu0 %v72_v36  ;;  %344 = vmatprep.subr.mxu1 %v211_v49 }
  0x41   :  { %132 = vmatprep.subr.mxu0 %v71_v38  ;;  %345 = vmatpush3.msra.mxu1 %v195_v51 }
  0x42   :  { %133 = vmatpush1.msra.mxu0 %v70_v40  ;;  %346 = vmatprep.subr.mxu1 %v210_v53 }
  0x43   :  { %134 = vmatprep.subr.mxu0 %v69_v42  ;;  %347 = vmatpush3.msra.mxu1 %v194_v55 }
  0x44   :  { %135 = vmatpush1.msra.mxu0 %v68_v44  ;;  %348 = vmatprep.subr.mxu1 %v209_v56 }
  0x45   :  { %136 = vmatprep.subr.mxu0 %v67_v46  ;;  %349 = vmatpush3.msra.mxu1 %v193_v57 }
  0x46   :  { %137 = vmatpush1.msra.mxu0 %v66_v48  ;;  %350 = vmatprep.subr.mxu1 %v208_v59 }
  0x47   :  { %138 = vmatprep.subr.mxu0 %v65_v50  ;;  %351 = vmatpush3.msra.mxu1 %v192_v60 }
  0x48   :  { %139 = vmatpush1.msra.mxu0 %v64_v52  ;;  %352 = vmatprep.subr.mxu1 %v207_v61 }
  0x49   :  { %173 = vmatmul.mubr.f32.vlgmr.msra.gmra.mxu0 %v62_v54  ;;  %353 = vmatpush3.msra.mxu1 %v191_v62 }
  0x4a   :  { %178 = vmatprep.mubr.f32.mxu0 %v466_v0  ;;  %354 = vmatprep.subr.mxu1 %v206_v63  ;;  %v98_v0 = vlaneseq }
  0x4b   :  { %355 = vmatpush3.msra.mxu1 %v190_v1 }
  0x4c   :  { %356 = vmatprep.subr.mxu1 %v205_v2  ;;  %v99_v4 = vshrl.u32 %v98_v0, 7 }
  0x4d   :  { %179 = vmatmul.mubr.f32.gmra.mxu0 %v63_v58  ;;  %357 = vmatpush3.msra.mxu1 %v189_v3 }
  0x4e   :  { %v100_v5 = vsub.s32 0, %v99_v4  ;;  %v104_v7 = vsub.s32 1, %v99_v4 }
  0x50   :  { %v101_v8 = vrot.slane %v96_v6, %v100_v5  ;;  %v105_v9 = vrot.slane %v96_v6, %v104_v7 }
 0x109   :  { %v174_v10 = vpop.f32.mrf.mxu0 }
 0x10a   :  { %v175_v11 = vadd.f32 %v174_v10, %v101_v8 }
 0x10b   :  { %v176_v12 = vpop.f32.mrf.mxu0 }
 0x10c   :  { %v177_v13 = vadd.f32 %v176_v12, %v105_v9  ;;  %v185_v16 = vmax.f32 %v175_v11, 0.0 }
 0x10d   :  { %v180_v14 = vpop.f32.mrf.mxu0 }
 0x10e   :  { %v186_v15 = vmax.f32 %v177_v13, 0.0  ;;  %v181_v17 = vadd.f32 %v180_v14, %v101_v8 }
 0x10f   :  { %v182_v18 = vpop.f32.mrf.mxu0 }
 0x110   :  { %v183_v19 = vadd.f32 %v182_v18, %v105_v9  ;;  %292 = vmatprep.mubr.f32.mxu1 %v186_v15  ;;  %v187_v21 = vmax.f32 %v181_v17, 0.0 }
 0x111   :  { %293 = vmatmul.mubr.f32.vlgmr.msra.gmra.mxu1 %v185_v16 }
 0x112   :  { %v188_v20 = vmax.f32 %v183_v19, 0.0 }
 0x114   :  { %297 = vmatprep.mubr.f32.mxu1 %v188_v20 }
 0x115   :  { %298 = vmatmul.mubr.f32.gmra.mxu1 %v187_v21 }
 0x1d1   :  { %v358_v22 = vpop.f32.mrf.mxu1 }
 0x1d3   :  { %v359_v24 = vpop.f32.mrf.mxu1 }
 0x1d4   :  { %v360_v25 = vadd.f32 %v359_v24, %v358_v22 }
 0x1d5   :  { %v361_v26 = vpop.f32.mrf.mxu1 }
 0x1d6   :  { %v295_v27 = vadd.f32 %v360_v25, %v325_v23 }
 0x1d7   :  { %v362_v28 = vpop.f32.mrf.mxu1 }
 0x1d8   :  { %v303_v29 = vadd.f32 %v295_v27, %v62_v54  ;;  %v363_v30 = vadd.f32 %v362_v28, %v361_v26 }
 0x1da   :  { %305 = vst [vmem:[#allocation8] sm:$0xff] %v303_v29  ;;  %v300_v31 = vadd.f32 %v363_v30, %v325_v23 }
 0x1dc   :  { %v304_v32 = vadd.f32 %v300_v31, %v63_v58 }
 0x1de   :  { %306 = vst [vmem:[#allocation8 + $0x8] sm:$0xff] %v304_v32 }
 0x1df   :  { %444 = shalt.err (!%p441_p5)
}
 0x1e0   :  { %318 = dma.vmem_to_hbm [thread:$0]  %s313_s13, 256, %s532_s5, [#allocation4], %s463_s28, %s463_s28, %s464_s29  }
 0x1e1   :  { %457 = dma.done.wait [#allocation4], 256  }
 0x1e2   :  { %458 = vsyncadd [#allocation4], 4294967040 }
 0x1e3   :  { %322 = vsyncpa [#allocation3], 1 }
 0x1e4   :  { %323 = vsyncpa [#allocation6], 1 }
 0x1e5   :  { %324 = vsyncpa [#allocation4], 1 }

</bundles_post_ra>
